<compile_context>
chip_gen: v7x
topology: tpu7x:2x2x1
jax: 0.10.0
libtpu: 0.0.40
codegen_flags: <defaults>
</compile_context>

<pallas_src>
import jax
import jax.numpy as jnp
from jax.experimental import pallas as pl
from jax.experimental.pallas import tpu as pltpu

_LANE = 128


def _inject_noise_kernel(w_ref, feat_ref, noise_ref, out_ref):
    # w_ref    : (C_tile, 1)     per-channel weights for this channel block
    # feat_ref : (1, C_tile, T)  feature tile for (n, spatial tile, c block)
    # noise_ref: (1, 1, T)       noise tile for (n, spatial tile); shared across
    #                            channel blocks (constant block index -> one DMA)
    # out_ref  : (1, C_tile, T)
    w = w_ref[...].astype(jnp.float32)            # (C_tile, 1)
    noise = noise_ref[...].astype(jnp.float32)    # (1, 1, T)
    feat = feat_ref[...].astype(jnp.float32)      # (1, C_tile, T)
    out_ref[...] = (feat + w[None, :, :] * noise).astype(out_ref.dtype)


def _sublane(itemsize):
    return {4: 8, 2: 16, 1: 32}.get(itemsize, 8)


def _device_config():
    """Return (per-block byte budget, scoped-VMEM limit) per TPU generation."""
    kind = ""
    try:
        kind = jax.devices()[0].device_kind.lower()
    except Exception:
        pass
    if "v7" in kind:                               # 64 MiB VMEM/TC, ~3.2 TB/s HBM
        return 7 << 20, 44 << 20
    if "v6" in kind:                               # 128 MiB VMEM, ~1.4 TB/s HBM
        return 6 << 20, 64 << 20
    if "v5 lite" in kind or "v5lite" in kind or "v5e" in kind:
        return 3 << 20, 24 << 20                   # default scoped limit is 16 MiB
    if "v2" in kind or "v3" in kind:               # small-VMEM parts
        return 1 << 20, 12 << 20
    return 4 << 20, 32 << 20                       # conservative default (v4/v5p/...)


def _largest_aligned_tile(extent, quantum, max_tile):
    """Largest multiple of `quantum` <= min(extent, max_tile); prefer a value
    that divides `extent` evenly (no ragged tail) when one exists that is at
    least half of the budget-limited maximum."""
    if extent <= max_tile:
        return extent
    hi = max(quantum, (max_tile // quantum) * quantum)
    t = hi
    while t >= quantum:
        if extent % t == 0:
            break
        t -= quantum
    if t >= quantum and t >= hi // 2:
        return t
    return hi


def _choose_tiles(n, c, hw, itemsize, block_budget):
    """Pick (c_tile, t) for feat/out blocks of shape (1, c_tile, t)."""
    sub = _sublane(itemsize)
    if c * hw * itemsize <= block_budget:
        c_tile, t = c, hw                          # whole (C, HW) plane per n
    else:
        min_c = c if c < sub else sub
        if min_c * hw * itemsize <= block_budget:
            # Tile channels, keep the full contiguous HW as the lane dim.
            max_c = max(min_c, (block_budget // (hw * itemsize)) // sub * sub)
            c_tile, t = _largest_aligned_tile(c, sub, max_c), hw
        else:
            # Huge spatial plane: also split HW (128-aligned, ragged tail OK).
            max_t = max(_LANE, (block_budget // (min_c * itemsize)) // _LANE * _LANE)
            c_tile, t = min_c, _largest_aligned_tile(hw, _LANE, max_t)

    # Megacore (v7x has 2 TensorCores): ensure >= 2 grid blocks when possible.
    if n * pl.cdiv(c, c_tile) * pl.cdiv(hw, t) < 2:
        if c >= 2 * sub:
            c_tile = _largest_aligned_tile(c, sub, c // 2)
        elif hw >= 2 * _LANE:
            t = _largest_aligned_tile(hw, _LANE, hw // 2)
    return c_tile, t


def _inject_weighted_noise_impl(feat, weight, noise):
    """feat: (N, C, H, W); weight: (1, C, 1, 1) or (C,); noise: (N, 1, H, W)."""
    N, C, H, W = feat.shape
    HW = H * W

    # Free reshapes (contiguous NCHW): lane dim becomes HW, not W.
    feat_f = feat.reshape(N, C, HW)
    noise_f = noise.reshape(N, 1, HW)              # dtype kept; cast in-kernel
    w_col = weight.reshape(C, 1)                   # dtype kept; cast in-kernel

    itemsize = jnp.dtype(feat.dtype).itemsize
    block_budget, vmem_limit = _device_config()
    c_tile, t = _choose_tiles(N, C, HW, itemsize, block_budget)
    grid = (N, pl.cdiv(HW, t), pl.cdiv(C, c_tile))  # channel axis innermost

    cost = pl.CostEstimate(
        flops=2 * N * C * HW,
        transcendentals=0,
        bytes_accessed=(itemsize * 2 * N * C * HW
                        + noise.dtype.itemsize * N * HW
                        + weight.dtype.itemsize * C),
    )

    out = pl.pallas_call(
        _inject_noise_kernel,
        out_shape=jax.ShapeDtypeStruct((N, C, HW), feat.dtype),
        grid_spec=pltpu.PrefetchScalarGridSpec(
            num_scalar_prefetch=0,
            grid=grid,
            in_specs=[
                # Tiny per-channel weight column for the current channel block.
                pl.BlockSpec((c_tile, 1), lambda n, s, cb: (cb, 0)),
                # Feature block: contiguous slab of c_tile channels x full T.
                pl.BlockSpec((1, c_tile, t), lambda n, s, cb: (n, cb, s)),
                # Noise block: index constant over the innermost (channel)
                # axis, so Pallas fetches it once per (n, spatial tile).
                pl.BlockSpec((1, 1, t), lambda n, s, cb: (n, 0, s)),
            ],
            out_specs=pl.BlockSpec((1, c_tile, t), lambda n, s, cb: (n, cb, s)),
        ),
        compiler_params=pltpu.CompilerParams(
            dimension_semantics=("parallel", "parallel", "parallel"),
            vmem_limit_bytes=vmem_limit,
        ),
        cost_estimate=cost,
        # feat is immediately replaced by the noised features in StyleGAN;
        # donate its buffer to the output (input 1 = feat_f -> output 0).
        input_output_aliases={1: 0},
    )(w_col, feat_f, noise_f)

    return out.reshape(N, C, H, W)


inject_weighted_noise = jax.jit(_inject_weighted_noise_impl)


if __name__ == "__main__":
    N, C, H, W = 2, 4, 16, 16
    key = jax.random.PRNGKey(0)
    k_feat, k_noise, k_w = jax.random.split(key, 3)

    feat = jax.random.normal(k_feat, (N, C, H, W), dtype=jnp.float32)
    # get_normal_noise((N, 1, H, W)) equivalent, supplied externally so the
    # kernel output is bitwise checkable.
    noise = jax.random.normal(k_noise, (N, 1, H, W), dtype=jnp.float32)
    # PyTorch __init__ uses zeros(1, C, 1, 1); use a deterministic nonzero
    # init so the weighted-noise path is actually exercised.
    weight = 0.1 * jax.random.normal(k_w, (1, C, 1, 1), dtype=jnp.float32)

    # Reference computed before the (aliasing) kernel call.
    ref = feat + weight.reshape(1, C, 1, 1) * noise

    out = inject_weighted_noise(feat, weight, noise)
    out = jax.block_until_ready(out)

    assert out.shape == (N, C, H, W)
    assert out.dtype == feat.dtype
    assert jnp.allclose(out, ref, atol=1e-6, rtol=1e-6)

    print("KERNEL_OK")
</pallas_src>

<mosaic_0001>
module attributes {stable_mosaic.version = 11 : i64} {
  func.func @_inject_noise_kernel(%arg0: i32, %arg1: i32, %arg2: i32, %arg3: memref<4x1xf32, #tpu.memory_space<vmem>>, %arg4: memref<1x4x256xf32, #tpu.memory_space<vmem>>, %arg5: memref<1x1x256xf32, #tpu.memory_space<vmem>>, %arg6: memref<1x4x256xf32, #tpu.memory_space<vmem>>) attributes {dimension_semantics = [#tpu.dimension_semantics<parallel>, #tpu.dimension_semantics<parallel>, #tpu.dimension_semantics<parallel>], iteration_bounds = array<i64: 2, 1, 1>, scalar_prefetch = 0 : i64, scratch_operands = 0 : i64, tpu.core_type = #tpu.core_type<tc>, window_params = [{transform_indices = @transform_0, window_bounds = array<i64: 4, 1>}, {transform_indices = @transform_1, window_bounds = array<i64: 1, 4, 256>}, {transform_indices = @transform_2, window_bounds = array<i64: 1, 1, 256>}, {transform_indices = @transform_3, window_bounds = array<i64: 1, 4, 256>}]} {
    %c0 = arith.constant 0 : index
    %c0_0 = arith.constant 0 : index
    %0 = vector.load %arg3[%c0, %c0_0] : memref<4x1xf32, #tpu.memory_space<vmem>>, vector<4x1xf32>
    %c0_1 = arith.constant 0 : index
    %c0_2 = arith.constant 0 : index
    %c0_3 = arith.constant 0 : index
    %1 = vector.load %arg5[%c0_1, %c0_2, %c0_3] : memref<1x1x256xf32, #tpu.memory_space<vmem>>, vector<1x1x256xf32>
    %c0_4 = arith.constant 0 : index
    %c0_5 = arith.constant 0 : index
    %c0_6 = arith.constant 0 : index
    %2 = vector.load %arg4[%c0_4, %c0_5, %c0_6] : memref<1x4x256xf32, #tpu.memory_space<vmem>>, vector<1x4x256xf32>
    %3 = vector.shape_cast %0 : vector<4x1xf32> to vector<1x4x1xf32>
    %4 = vector.broadcast %3 : vector<1x4x1xf32> to vector<1x4x256xf32>
    %5 = vector.broadcast %1 : vector<1x1x256xf32> to vector<1x4x256xf32>
    %6 = arith.mulf %4, %5 : vector<1x4x256xf32>
    %7 = arith.addf %2, %6 : vector<1x4x256xf32>
    %c0_7 = arith.constant 0 : index
    %c0_8 = arith.constant 0 : index
    %c0_9 = arith.constant 0 : index
    %8 = vector.load %arg6[%c0_7, %c0_8, %c0_9] : memref<1x4x256xf32, #tpu.memory_space<vmem>>, vector<1x4x256xf32>
    tpu.vector_store %arg6[%c0_7, %c0_8, %c0_9], %7 {strides = array<i32>} : memref<1x4x256xf32, #tpu.memory_space<vmem>>, vector<1x4x256xf32>,
    return
  }
  func.func @transform_0(%arg0: i32, %arg1: i32, %arg2: i32) -> (i32, i32) {
    %c0_i32 = arith.constant 0 : i32
    %c0_i32_0 = arith.constant 0 : i32
    return %arg2, %c0_i32 : i32, i32
  }
  func.func @transform_1(%arg0: i32, %arg1: i32, %arg2: i32) -> (i32, i32, i32) {
    %c0_i32 = arith.constant 0 : i32
    return %arg0, %arg2, %arg1 : i32, i32, i32
  }
  func.func @transform_2(%arg0: i32, %arg1: i32, %arg2: i32) -> (i32, i32, i32) {
    %c0_i32 = arith.constant 0 : i32
    %c0_i32_0 = arith.constant 0 : i32
    return %arg0, %c0_i32, %arg1 : i32, i32, i32
  }
  func.func @transform_3(%arg0: i32, %arg1: i32, %arg2: i32) -> (i32, i32, i32) {
    %c0_i32 = arith.constant 0 : i32
    return %arg0, %arg2, %arg1 : i32, i32, i32
  }
}

</mosaic_0001>

<bundles_post_ra>
// kernel: _inject_weighted_noise_impl.1
= control target key start
LH: loop header
LB: loop body
LE: loop exit
PB: predicated region body
PF: predicated region fallthrough
CT: control target
= control target key end

     0   :  { %s546_s12 = smov 0   ;;  %s548_s13 = smov 0   ;;  %s585_s0 = inlined_call_operand.vmem [shape: f32[4,1], index: 0, kind: input, shape index: {}]   ;;  %s586_s1 = inlined_call_operand.vmem [shape: f32[2,4,256], index: 1, kind: input, shape index: {}, may-alias: {1,3}]   ;;  %s587_s2 = inlined_call_operand.vmem [shape: f32[2,1,256], index: 2, kind: input, shape index: {}]   ;;  %s588_s3 = inlined_call_operand.vmem [shape: f32[2,4,256], index: 3, kind: output, shape index: {}, may-alias: {1,3}]  }
   0x1   :  { %s550_s14 = smov 0  }
   0x2 LB: > { %s32_s15 = sadd.s32 1, %s519_s13  ;;  %p465_p0 = scmp.ge.s32.totalorder %s523_s14, 1  ;;  %s523_s14 = sphi %s550_s14, %s13_s14   ;;  %s519_s13 = sphi %s548_s13, %s590_s13   ;;  %s515_s12 = sphi %s546_s12, %s589_s12  }
   0x3   : > { %p34_p1 = scmp.ge.s32.totalorder %s32_s15, 2  ;;  %p198_p2 = scmp.lt.s32.totalorder %s523_s14, 3 }
   0x5   : > { %s592_s15 = smov (%p34_p1, %s32_s15), 0  ;;  %p199_p3 = pnand %p465_p0, %p198_p2 }
   0x6   : > { %v291_v0 = vld [vmem:[%s585_s0] sm:$0xf] (!%p199_p3)  ;;  %v525_v1 = vmov (!%p199_p3), 0   ;;  %p255_p4 = scmp.lt.s32.totalorder (!%p199_p3), %s515_s12, 1  ;;  %v300_v2 = vlaneseq (!%p199_p3) }
   0x7   : > { %202 = sbr.rel (%p199_p3) target bundleno = 143 (0x8f), region = 32  ;;  %500 = vset.pattern.permute.xlu0 (!%p199_p3), %v525_v1 }
   0x8   : > { %296 = vperm.xlu0 (!%p199_p3), %500, %v291_v0   ;;  %v301_v3 = vshrl.u32 (!%p199_p3), %v300_v2, 7 }
   0xa   : > { %v302_v4 = vsub.s32 (!%p199_p3), 0, %v301_v3  ;;  %v306_v5 = vsub.s32 (!%p199_p3), 1, %v301_v3 }
   0xe   : > { %s594_s12 = smov (!%p255_p4, %s515_s12), 1 }
   0xf   : > { %s468_s18 = sshll.u32 %s594_s12, 1  ;;  %s473_s22 = sshll.u32 %s594_s12, 3 }
  0x10   : > { %s275_s21 = scalar_lea.vmem %s587_s2, %s468_s18  ;;  %s266_s25 = scalar_lea.vmem %s586_s1, %s473_s22 }
  0x11   : > { %v292_v6 = vld [vmem:[%s275_s21] sm:$0x3]  ;;  %s289_s28 = scalar_lea.vmem %s588_s3, %s473_s22 }
  0x12   : > { %v303_v7 = vrot.slane %v292_v6, %v302_v4  ;;  %v307_v8 = vrot.slane %v292_v6, %v306_v5  ;;  %v293_v12 = vld [vmem:[%s266_s25] sm:$0xff] }
  0x87   : > { %v297_v9 = vpop.permute.xlu0 %296 }
  0x88   : > { %v310_v10 = vmul.f32 %v303_v7, %v297_v9  ;;  %v311_v11 = vmul.f32 %v307_v8, %v297_v9 }
  0x8a   : > { %v314_v13 = vcombine.low %v310_v10, %v311_v11 }
  0x8c   : > { %v316_v14 = vadd.f32 %v314_v13, %v293_v12 }
  0x8e   : > { %317 = vst [vmem:[%s289_s28] sm:$0xff] %v316_v14 }
  0x8f PF: > { %s13_s14 = sadd.s32 1, %s523_s14   ;;  %s589_s12 = smov %s519_s13 }
  0x90   : > { %p10_p5 = scmp.ge.s32.totalorder %s13_s14, 4   ;;  %s590_s13 = smov %s592_s15 }
  0x92   :  { %12 = sbr.rel (!%p10_p5) target bundleno = 2 (0x2), region = 68 }

</bundles_post_ra>
